<compile_context>
chip_gen: v5e
topology: v5e:2x2
jax: 0.10.0
libtpu: 0.0.40
codegen_flags: <defaults>
</compile_context>

<pallas_src>
import functools

import jax
import jax.numpy as jnp
from jax import lax
from jax.experimental import pallas as pl
from jax.experimental.pallas import tpu as pltpu


@functools.lru_cache(maxsize=None)
def _vmem_capacity_bytes():
    """Per-core VMEM capacity; conservative 64 MiB (v7x) if unknown."""
    try:
        cap = getattr(pltpu.get_tpu_info(), "vmem_capacity_bytes", None)
        if cap:
            cap = int(cap)
            if (16 << 20) <= cap <= (256 << 20):
                return cap
    except Exception:
        pass
    return 64 << 20


def _down_conv_kernel(blk_ref, rh_ref, ch_ref, wa_ref, wb_ref, b_ref, out_ref,
                      *, t_ho, wo_b, cin, tn):
    """One (batch, cout-tile, row-tile) grid step of the strided 3x3 conv.

    blk_ref: (t_ho, 2, wo_b, 2*cin)  row tile; axis 1 = padded-row parity,
             last axis packs (column parity, channel): [:cin] = even columns
             (2*wo), [cin:] = odd columns (2*wo + 1).
    rh_ref : (1, wo_b, 2*cin)        bottom halo: even padded row 2*(i+1)*t_ho
    ch_ref : (t_ho, 3, cin)          column halo: padded column 2*wo_b for the
                                     three kh taps of every output row
    wa_ref : (3, 2*cin, tn)          weights for kw in {0, 1}, per kh
    wb_ref : (3, cin, tn)            weights for kw == 2, per kh
    b_ref  : (1, tn)                 bias (f32)
    out_ref: (t_ho, wo_b, tn)
    """
    m = t_ho * wo_b
    e = jnp.squeeze(blk_ref[:, 0:1], axis=1)                 # kh = 0 rows
    o = jnp.squeeze(blk_ref[:, 1:2], axis=1)                 # kh = 1 rows
    e_dn = jnp.concatenate([e[1:], rh_ref[...]], axis=0)     # kh = 2 rows
    rows = (e, o, e_dn)
    ch = ch_ref[...]

    # Flat rows that correspond to the last output column (take the halo).
    lastcol = (lax.broadcasted_iota(jnp.int32, (m, cin), 0) % wo_b) == (wo_b - 1)

    acc = b_ref[...].astype(jnp.float32)          # (1, tn): bias folded in
    for kh in range(3):
        rk = rows[kh]
        # kw in {0, 1}: untouched operand -> exact-view reshape, no copy.
        acc = acc + jnp.dot(rk.reshape(m, 2 * cin), wa_ref[kh],
                            preferred_element_type=jnp.float32)
        # kw == 2: shift by one W pair (Cin wide only); the last output column
        # takes its value from the column-halo array.
        # TODO(synk): a pltpu.roll along the W (sublane) axis would move this
        #             shift onto the otherwise idle XLU slot.
        src = rk[:, :, :cin].reshape(m, cin)
        shifted = jnp.concatenate([src[1:], src[:1]], axis=0)
        halo = jnp.broadcast_to(ch[:, kh, :][:, None, :], (t_ho, wo_b, cin))
        op2 = jnp.where(lastcol, halo.reshape(m, cin), shifted)
        acc = acc + jnp.dot(op2, wb_ref[kh], preferred_element_type=jnp.float32)

    out_ref[...] = acc.reshape(t_ho, wo_b, tn).astype(out_ref.dtype)


def downsample_conv2d(x_nchw, weight, bias, *, stride=2, padding=(2, 1),
                      compute_dtype=jnp.bfloat16, out_dtype=None,
                      target_rows=None, cout_tile=None, prefer_pallas=None):
    """Conv2d(Cin, Cout, 3, stride=2, padding=(ph, pw)) -- Downsample.op.

    bf16 x bf16 products with f32 accumulation (stated numeric contract).
    """
    N, Cin, H, W = x_nchw.shape
    Cout, Cin_w, KH, KW = weight.shape
    assert Cin == Cin_w, "input channel mismatch"
    assert (KH, KW) == (3, 3) and stride == 2, "Downsample uses 3x3 / stride 2"
    ph, pw = padding
    Ho = (H + 2 * ph - KH) // stride + 1
    Wo = (W + 2 * pw - KW) // stride + 1
    out_dtype = out_dtype or x_nchw.dtype

    # Small-Cin guard: with Cin < ~64 the MXU depth / operand lanes are mostly
    # idle -- the plain XLA conv is the better tool there.
    use_pallas = prefer_pallas if prefer_pallas is not None else (Cin >= 64)
    if not use_pallas:
        out = lax.conv_general_dilated(
            x_nchw, weight, (stride, stride), ((ph, ph), (pw, pw)),
            dimension_numbers=("NCHW", "OIHW", "NCHW"))
        return (out + bias.reshape(1, -1, 1, 1)).astype(out_dtype)

    csz = jnp.dtype(compute_dtype).itemsize
    osz = jnp.dtype(out_dtype).itemsize
    vmem_cap = _vmem_capacity_bytes()

    def rup(a, b):
        return -(-a // b) * b

    # ---- Cout tiling (fit v7x's 64 MiB with the double-buffered weights) ---
    Cout_p128 = rup(Cout, 128)
    if cout_tile is not None:
        tn = rup(int(cout_tile), 128)
        Cout_p = rup(Cout, tn)
    else:
        w_all = 2 * 9 * Cin * Cout_p128 * csz          # double-buffered bf16
        if w_all <= int(0.35 * vmem_cap):
            tn, Cout_p = Cout_p128, Cout_p128           # single Cout tile
        else:
            tn = 256                                    # matches 256-wide MXU
            Cout_p = rup(Cout, tn)
    n_cout = Cout_p // tn

    # ---- row tiling ---------------------------------------------------------
    Wo_b = rup(Wo, 8)                                   # lane/sublane friendly
    if target_rows is None:
        # bigger tiles on 128 MiB parts (v5e/v6e), smaller on v7x (64 MiB)
        target_rows = 1024 if vmem_cap >= (96 << 20) else 512

    lane2c, lanec, lanen = rup(2 * Cin, 128), rup(Cin, 128), rup(tn, 128)

    def vmem_estimate(t):
        m = t * Wo_b
        blk = t * 2 * Wo_b * lane2c * csz               # fused parity block
        rh = Wo_b * lane2c * csz                        # bottom row halo
        chb = t * 8 * lanec * csz                       # column halo
        wa = 3 * rup(2 * Cin, 8) * lanen * csz
        wb = 3 * rup(Cin, 8) * lanen * csz
        bb = 8 * lanen * 4
        ob = t * Wo_b * lanen * osz
        tmp = m * lane2c * csz + m * lanen * 4 + 3 * m * lanec * csz
        return 2 * (blk + rh + chb) + 2 * (wa + wb + bb) + 2 * ob + tmp + (8 << 20)

    t_ho = max(2, min(max(Ho, 2), -(-target_rows // Wo_b)))
    while vmem_estimate(t_ho) > int(0.85 * vmem_cap) and t_ho > 2:
        t_ho = max(2, t_ho // 2)
    n_tiles = -(-Ho // t_ho)
    t_ho = max(2, -(-Ho // n_tiles))                    # divide Ho evenly
    n_tiles = -(-Ho // t_ho)
    Ho_pad = n_tiles * t_ho

    vmem_limit = int(min(max(32 << 20, int(1.25 * vmem_estimate(t_ho))),
                         vmem_cap - (8 << 20)))
    vmem_limit = max(vmem_limit, 16 << 20)

    Hp = 2 * Ho_pad + 2                 # padded rows 0 .. 2*Ho_pad
    Wp = 2 * Wo_b + 2                   # padded cols 0 .. 2*Wo_b
    Wq = Wp // 2                        # = Wo_b + 1 W pairs

    # ---- wrapper glue (one fused transpose+pad+cast pass over the input) ---
    x = jnp.transpose(x_nchw, (0, 2, 3, 1)).astype(compute_dtype)
    x = jnp.pad(x, ((0, 0), (ph, Hp - H - ph), (pw, Wp - W - pw), (0, 0)))
    # (N, Hp, Wp, Cin) -> (N, Hp/2, 2, Wq, 2*Cin): pure reshape, no movement.
    x6 = x.reshape(N, Hp // 2, 2, Wq, 2 * Cin)

    # Column halo: padded column 2*Wo_b for the three kh taps of each row.
    col = x[:, :, 2 * Wo_b, :]                                   # (N, Hp, Cin)
    xcol = jnp.stack([col[:, 0:2 * Ho_pad:2],
                      col[:, 1:2 * Ho_pad:2],
                      col[:, 2:2 * Ho_pad + 2:2]], axis=2)       # (N,Ho_pad,3,Cin)

    # Weights (Cout, Cin, 3, 3) -> per-kh (kw, ci) blocks, bf16, Cout padded.
    w_t = jnp.transpose(weight, (2, 3, 1, 0))                    # (3,3,Cin,Cout)
    w_a = w_t[:, 0:2].reshape(3, 2 * Cin, Cout)
    w_b = w_t[:, 2]
    w_a = jnp.pad(w_a, ((0, 0), (0, 0), (0, Cout_p - Cout))).astype(compute_dtype)
    w_b = jnp.pad(w_b, ((0, 0), (0, 0), (0, Cout_p - Cout))).astype(compute_dtype)
    b_p = jnp.pad(bias.astype(jnp.float32), (0, Cout_p - Cout)).reshape(1, Cout_p)

    kernel = functools.partial(_down_conv_kernel, t_ho=t_ho, wo_b=Wo_b,
                               cin=Cin, tn=tn)

    out = pl.pallas_call(
        kernel,
        out_shape=jax.ShapeDtypeStruct((N, Ho_pad, Wo_b, Cout_p), out_dtype),
        grid_spec=pltpu.PrefetchScalarGridSpec(
            num_scalar_prefetch=0,
            grid=(N, n_cout, n_tiles),
            in_specs=[
                # fused (even, odd) parity row tile -- one DMA per step
                pl.BlockSpec((None, t_ho, 2, Wo_b, 2 * Cin),
                             lambda n, j, i: (n, i, 0, 0, 0)),
                # bottom halo: even padded row of H-pair (i+1)*t_ho
                pl.BlockSpec((None, 1, None, Wo_b, 2 * Cin),
                             lambda n, j, i: (n, (i + 1) * t_ho, 0, 0, 0)),
                # column halo (padded column 2*Wo_b per output row / kh tap)
                pl.BlockSpec((None, t_ho, 3, Cin),
                             lambda n, j, i: (n, i, 0, 0)),
                # weights / bias -- constant across (n, i), change with j only
                pl.BlockSpec((3, 2 * Cin, tn), lambda n, j, i: (0, 0, j)),
                pl.BlockSpec((3, Cin, tn), lambda n, j, i: (0, 0, j)),
                pl.BlockSpec((1, tn), lambda n, j, i: (0, j)),
            ],
            out_specs=pl.BlockSpec((None, t_ho, Wo_b, tn),
                                   lambda n, j, i: (n, i, 0, j)),
        ),
        compiler_params=pltpu.CompilerParams(
            dimension_semantics=("parallel", "parallel", "parallel"),
            vmem_limit_bytes=vmem_limit),
    )(x6, x6, xcol, w_a, w_b, b_p)

    out = out[:, :Ho, :Wo, :Cout]                # drop row/col/channel padding
    return jnp.transpose(out, (0, 3, 1, 2))      # back to NCHW


class Downsample:
    """JAX/Pallas port of the PyTorch Downsample module (dims=2, use_conv=True)."""

    def __init__(self, channels, use_conv, dims=2, out_channels=None,
                 padding=(2, 1), key=None, prefer_pallas=None):
        self.channels = channels
        self.out_channels = out_channels or channels
        self.use_conv = use_conv
        self.dims = dims
        self.padding = padding
        assert dims == 2, "only dims=2 is implemented here"
        if not use_conv:
            # TODO(synk): avg_pool_nd path (use_conv=False) not implemented.
            raise NotImplementedError("use_conv=False (avg pool) not implemented")
        key = key if key is not None else jax.random.PRNGKey(0)
        kw_key, kb_key = jax.random.split(key)
        self.weight = 0.1 * jax.random.normal(
            kw_key, (self.out_channels, self.channels, 3, 3), dtype=jnp.float32)
        self.bias = 0.1 * jax.random.normal(
            kb_key, (self.out_channels,), dtype=jnp.float32)
        self._fn = jax.jit(functools.partial(
            downsample_conv2d, stride=2, padding=self.padding,
            prefer_pallas=prefer_pallas))

    def __call__(self, x):
        assert x.shape[1] == self.channels
        return self._fn(x, self.weight, self.bias)


def _reference(x, w, b, padding):
    """XLA reference on the same bf16-rounded operands (f32 accumulation)."""
    xq = x.astype(jnp.bfloat16).astype(jnp.float32)
    wq = w.astype(jnp.bfloat16).astype(jnp.float32)
    ph, pw = padding
    out = lax.conv_general_dilated(
        xq, wq, window_strides=(2, 2), padding=((ph, ph), (pw, pw)),
        dimension_numbers=("NCHW", "OIHW", "NCHW"),
        precision=lax.Precision.HIGHEST)
    return out + b.reshape(1, -1, 1, 1)


if __name__ == "__main__":
    key = jax.random.PRNGKey(0)
    kx, kp, k1, k2, k3 = jax.random.split(key, 5)

    # ---- test 1: module forward (small shapes, Pallas path forced) --------
    N, C, H, W = 2, 4, 16, 16
    out_channels = 8
    x = jax.random.normal(kx, (N, C, H, W), dtype=jnp.float32)
    module = Downsample(channels=C, use_conv=True, dims=2,
                        out_channels=out_channels, padding=(2, 1), key=kp,
                        prefer_pallas=True)
    y = jax.block_until_ready(module(x))

    Ho = (H + 4 - 3) // 2 + 1
    Wo = (W + 2 - 3) // 2 + 1
    assert y.shape == (N, out_channels, Ho, Wo), y.shape
    ref = _reference(x, module.weight, module.bias, (2, 1))
    err = float(jnp.max(jnp.abs(y - ref)))
    assert jnp.allclose(y, ref, atol=2e-3, rtol=2e-3), f"max abs err {err}"

    # ---- test 2: multiple row tiles + Cout-tile grid axis -----------------
    C2, Co2, H2, W2 = 8, 256, 12, 10
    x2 = jax.random.normal(k1, (1, C2, H2, W2), dtype=jnp.float32)
    w2 = 0.1 * jax.random.normal(k2, (Co2, C2, 3, 3), dtype=jnp.float32)
    b2 = 0.1 * jax.random.normal(k3, (Co2,), dtype=jnp.float32)
    f2 = jax.jit(functools.partial(downsample_conv2d, target_rows=16,
                                   cout_tile=128, prefer_pallas=True))
    y2 = jax.block_until_ready(f2(x2, w2, b2))

    Ho2 = (H2 + 4 - 3) // 2 + 1
    Wo2 = (W2 + 2 - 3) // 2 + 1
    assert y2.shape == (1, Co2, Ho2, Wo2), y2.shape
    ref2 = _reference(x2, w2, b2, (2, 1))
    err2 = float(jnp.max(jnp.abs(y2 - ref2)))
    assert jnp.allclose(y2, ref2, atol=2e-3, rtol=2e-3), f"max abs err {err2}"

    print("KERNEL_OK")
</pallas_src>

<mosaic_0001>
module attributes {stable_mosaic.version = 11 : i64} {
  func.func @_down_conv_kernel(%arg0: i32, %arg1: i32, %arg2: i32, %arg3: memref<1x9x2x8x8xbf16, #tpu.memory_space<vmem>>, %arg4: memref<1x1x1x8x8xbf16, #tpu.memory_space<vmem>>, %arg5: memref<1x9x3x4xbf16, #tpu.memory_space<vmem>>, %arg6: memref<3x8x128xbf16, #tpu.memory_space<vmem>>, %arg7: memref<3x4x128xbf16, #tpu.memory_space<vmem>>, %arg8: memref<1x128xf32, #tpu.memory_space<vmem>>, %arg9: memref<1x9x8x128xf32, #tpu.memory_space<vmem>>) attributes {dimension_semantics = [#tpu.dimension_semantics<parallel>, #tpu.dimension_semantics<parallel>, #tpu.dimension_semantics<parallel>], iteration_bounds = array<i64: 2, 1, 1>, scalar_prefetch = 0 : i64, scratch_operands = 0 : i64, tpu.core_type = #tpu.core_type<tc>, window_params = [{transform_indices = @transform_0, window_bounds = array<i64: 1, 9, 2, 8, 8>}, {transform_indices = @transform_1, window_bounds = array<i64: 1, 1, 1, 8, 8>}, {transform_indices = @transform_2, window_bounds = array<i64: 1, 9, 3, 4>}, {transform_indices = @transform_3, window_bounds = array<i64: 3, 8, 128>}, {transform_indices = @transform_4, window_bounds = array<i64: 3, 4, 128>}, {transform_indices = @transform_5, window_bounds = array<i64: 1, 128>}, {transform_indices = @transform_6, window_bounds = array<i64: 1, 9, 8, 128>}]} {
    %c0 = arith.constant 0 : index
    %c0_0 = arith.constant 0 : index
    %c0_1 = arith.constant 0 : index
    %c0_2 = arith.constant 0 : index
    %c0_3 = arith.constant 0 : index
    %0 = vector.load %arg3[%c0, %c0_0, %c0_1, %c0_2, %c0_3] : memref<1x9x2x8x8xbf16, #tpu.memory_space<vmem>>, vector<1x9x1x8x8xbf16>
    %1 = vector.shape_cast %0 : vector<1x9x1x8x8xbf16> to vector<9x1x8x8xbf16>
    %2 = vector.shape_cast %1 : vector<9x1x8x8xbf16> to vector<9x8x8xbf16>
    %c0_4 = arith.constant 0 : index
    %c0_5 = arith.constant 0 : index
    %c1 = arith.constant 1 : index
    %c0_6 = arith.constant 0 : index
    %c0_7 = arith.constant 0 : index
    %3 = vector.load %arg3[%c0_4, %c0_5, %c1, %c0_6, %c0_7] : memref<1x9x2x8x8xbf16, #tpu.memory_space<vmem>>, vector<1x9x1x8x8xbf16>
    %4 = vector.shape_cast %3 : vector<1x9x1x8x8xbf16> to vector<9x1x8x8xbf16>
    %5 = vector.shape_cast %4 : vector<9x1x8x8xbf16> to vector<9x8x8xbf16>
    %6 = vector.extract_strided_slice %2 {offsets = [1, 0, 0], sizes = [8, 8, 8], strides = [1, 1, 1]} : vector<9x8x8xbf16> to vector<8x8x8xbf16>
    %c0_8 = arith.constant 0 : index
    %c0_9 = arith.constant 0 : index
    %c0_10 = arith.constant 0 : index
    %c0_11 = arith.constant 0 : index
    %c0_12 = arith.constant 0 : index
    %7 = vector.load %arg4[%c0_8, %c0_9, %c0_10, %c0_11, %c0_12] : memref<1x1x1x8x8xbf16, #tpu.memory_space<vmem>>, vector<1x1x1x8x8xbf16>
    %8 = vector.shape_cast %7 : vector<1x1x1x8x8xbf16> to vector<1x8x8xbf16>
    %9 = tpu.concatenate %6, %8 in 0 : vector<8x8x8xbf16>, vector<1x8x8xbf16> -> vector<9x8x8xbf16>
    %c0_13 = arith.constant 0 : index
    %c0_14 = arith.constant 0 : index
    %c0_15 = arith.constant 0 : index
    %c0_16 = arith.constant 0 : index
    %10 = vector.load %arg5[%c0_13, %c0_14, %c0_15, %c0_16] : memref<1x9x3x4xbf16, #tpu.memory_space<vmem>>, vector<1x9x3x4xbf16>
    %11 = vector.shape_cast %10 : vector<1x9x3x4xbf16> to vector<9x3x4xbf16>
    %12 = tpu.iota {dimensions = array<i32: 0>} : vector<72x4xi32>
    %c8_i32 = arith.constant 8 : i32
    %c0_i32 = arith.constant 0 : i32
    %13 = arith.cmpi eq, %c8_i32, %c0_i32 : i32
    %c1_i32 = arith.constant 1 : i32
    %14 = arith.select %13, %c1_i32, %c8_i32 : i32
    %15 = vector.broadcast %14 : i32 to vector<72x4xi32>
    %16 = arith.remsi %12, %15 : vector<72x4xi32>
    %c0_i32_17 = arith.constant 0 : i32
    %17 = vector.broadcast %c0_i32_17 : i32 to vector<72x4xi32>
    %18 = arith.cmpi ne, %16, %17 : vector<72x4xi32>
    %c0_i32_18 = arith.constant 0 : i32
    %19 = vector.broadcast %c0_i32_18 : i32 to vector<72x4xi32>
    %20 = arith.cmpi slt, %16, %19 : vector<72x4xi32>
    %c0_i32_19 = arith.constant 0 : i32
    %21 = arith.cmpi slt, %14, %c0_i32_19 : i32
    %22 = vector.broadcast %21 : i1 to vector<72x4xi1>
    %23 = vector.broadcast %22 : vector<72x4xi1> to vector<72x4xi1>
    %24 = arith.xori %20, %23 : vector<72x4xi1>
    %25 = arith.andi %24, %18 : vector<72x4xi1>
    %26 = vector.broadcast %14 : i32 to vector<72x4xi32>
    %27 = arith.addi %16, %26 : vector<72x4xi32>
    %28 = arith.select %25, %27, %16 : vector<72x4xi1>, vector<72x4xi32>
    %c7_i32 = arith.constant 7 : i32
    %29 = vector.broadcast %c7_i32 : i32 to vector<72x4xi32>
    %30 = arith.cmpi eq, %28, %29 : vector<72x4xi32>
    %c0_20 = arith.constant 0 : index
    %c0_21 = arith.constant 0 : index
    %31 = vector.load %arg8[%c0_20, %c0_21] : memref<1x128xf32, #tpu.memory_space<vmem>>, vector<1x128xf32>
    %32 = vector.shape_cast %2 : vector<9x8x8xbf16> to vector<72x8xbf16>
    %c0_22 = arith.constant 0 : index
    %c0_23 = arith.constant 0 : index
    %c0_24 = arith.constant 0 : index
    %33 = vector.load %arg6[%c0_22, %c0_23, %c0_24] : memref<3x8x128xbf16, #tpu.memory_space<vmem>>, vector<1x8x128xbf16>
    %34 = vector.shape_cast %33 : vector<1x8x128xbf16> to vector<8x128xbf16>
    %cst = arith.constant dense<0.000000e+00> : vector<72x128xf32>
    %35 = tpu.matmul %32, %34, %cst {dimension_numbers = #tpu.dot_dimension_numbers<[1], [0], [0], [1], [0, 0, 1, 1], [], []>} : vector<72x8xbf16>, vector<8x128xbf16>, vector<72x128xf32> -> vector<72x128xf32>
    %36 = vector.broadcast %31 : vector<1x128xf32> to vector<72x128xf32>
    %37 = arith.addf %36, %35 : vector<72x128xf32>
    %38 = vector.extract_strided_slice %2 {offsets = [0, 0, 0], sizes = [9, 8, 4], strides = [1, 1, 1]} : vector<9x8x8xbf16> to vector<9x8x4xbf16>
    %39 = vector.shape_cast %38 : vector<9x8x4xbf16> to vector<72x4xbf16>
    %40 = vector.extract_strided_slice %39 {offsets = [1, 0], sizes = [71, 4], strides = [1, 1]} : vector<72x4xbf16> to vector<71x4xbf16>
    %41 = vector.extract_strided_slice %39 {offsets = [0, 0], sizes = [1, 4], strides = [1, 1]} : vector<72x4xbf16> to vector<1x4xbf16>
    %42 = tpu.concatenate %40, %41 in 0 : vector<71x4xbf16>, vector<1x4xbf16> -> vector<72x4xbf16>
    %43 = vector.extract_strided_slice %11 {offsets = [0, 0, 0], sizes = [9, 1, 4], strides = [1, 1, 1]} : vector<9x3x4xbf16> to vector<9x1x4xbf16>
    %44 = vector.shape_cast %43 : vector<9x1x4xbf16> to vector<9x4xbf16>
    %45 = vector.shape_cast %44 : vector<9x4xbf16> to vector<9x1x4xbf16>
    %46 = vector.shape_cast %45 : vector<9x1x4xbf16> to vector<9x1x4xbf16>
    %47 = vector.broadcast %46 : vector<9x1x4xbf16> to vector<9x8x4xbf16>
    %48 = vector.shape_cast %47 : vector<9x8x4xbf16> to vector<72x4xbf16>
    %49 = arith.select %30, %48, %42 : vector<72x4xi1>, vector<72x4xbf16>
    %c0_25 = arith.constant 0 : index
    %c0_26 = arith.constant 0 : index
    %c0_27 = arith.constant 0 : index
    %50 = vector.load %arg7[%c0_25, %c0_26, %c0_27] : memref<3x4x128xbf16, #tpu.memory_space<vmem>>, vector<1x4x128xbf16>
    %51 = vector.shape_cast %50 : vector<1x4x128xbf16> to vector<4x128xbf16>
    %cst_28 = arith.constant dense<0.000000e+00> : vector<72x128xf32>
    %52 = tpu.matmul %49, %51, %cst_28 {dimension_numbers = #tpu.dot_dimension_numbers<[1], [0], [0], [1], [0, 0, 1, 1], [], []>} : vector<72x4xbf16>, vector<4x128xbf16>, vector<72x128xf32> -> vector<72x128xf32>
    %53 = arith.addf %37, %52 : vector<72x128xf32>
    %54 = vector.shape_cast %5 : vector<9x8x8xbf16> to vector<72x8xbf16>
    %c1_29 = arith.constant 1 : index
    %c0_30 = arith.constant 0 : index
    %c0_31 = arith.constant 0 : index
    %55 = vector.load %arg6[%c1_29, %c0_30, %c0_31] : memref<3x8x128xbf16, #tpu.memory_space<vmem>>, vector<1x8x128xbf16>
    %56 = vector.shape_cast %55 : vector<1x8x128xbf16> to vector<8x128xbf16>
    %cst_32 = arith.constant dense<0.000000e+00> : vector<72x128xf32>
    %57 = tpu.matmul %54, %56, %cst_32 {dimension_numbers = #tpu.dot_dimension_numbers<[1], [0], [0], [1], [0, 0, 1, 1], [], []>} : vector<72x8xbf16>, vector<8x128xbf16>, vector<72x128xf32> -> vector<72x128xf32>
    %58 = arith.addf %53, %57 : vector<72x128xf32>
    %59 = vector.extract_strided_slice %5 {offsets = [0, 0, 0], sizes = [9, 8, 4], strides = [1, 1, 1]} : vector<9x8x8xbf16> to vector<9x8x4xbf16>
    %60 = vector.shape_cast %59 : vector<9x8x4xbf16> to vector<72x4xbf16>
    %61 = vector.extract_strided_slice %60 {offsets = [1, 0], sizes = [71, 4], strides = [1, 1]} : vector<72x4xbf16> to vector<71x4xbf16>
    %62 = vector.extract_strided_slice %60 {offsets = [0, 0], sizes = [1, 4], strides = [1, 1]} : vector<72x4xbf16> to vector<1x4xbf16>
    %63 = tpu.concatenate %61, %62 in 0 : vector<71x4xbf16>, vector<1x4xbf16> -> vector<72x4xbf16>
    %64 = vector.extract_strided_slice %11 {offsets = [0, 1, 0], sizes = [9, 1, 4], strides = [1, 1, 1]} : vector<9x3x4xbf16> to vector<9x1x4xbf16>
    %65 = vector.shape_cast %64 : vector<9x1x4xbf16> to vector<9x4xbf16>
    %66 = vector.shape_cast %65 : vector<9x4xbf16> to vector<9x1x4xbf16>
    %67 = vector.shape_cast %66 : vector<9x1x4xbf16> to vector<9x1x4xbf16>
    %68 = vector.broadcast %67 : vector<9x1x4xbf16> to vector<9x8x4xbf16>
    %69 = vector.shape_cast %68 : vector<9x8x4xbf16> to vector<72x4xbf16>
    %70 = arith.select %30, %69, %63 : vector<72x4xi1>, vector<72x4xbf16>
    %c1_33 = arith.constant 1 : index
    %c0_34 = arith.constant 0 : index
    %c0_35 = arith.constant 0 : index
    %71 = vector.load %arg7[%c1_33, %c0_34, %c0_35] : memref<3x4x128xbf16, #tpu.memory_space<vmem>>, vector<1x4x128xbf16>
    %72 = vector.shape_cast %71 : vector<1x4x128xbf16> to vector<4x128xbf16>
    %cst_36 = arith.constant dense<0.000000e+00> : vector<72x128xf32>
    %73 = tpu.matmul %70, %72, %cst_36 {dimension_numbers = #tpu.dot_dimension_numbers<[1], [0], [0], [1], [0, 0, 1, 1], [], []>} : vector<72x4xbf16>, vector<4x128xbf16>, vector<72x128xf32> -> vector<72x128xf32>
    %74 = arith.addf %58, %73 : vector<72x128xf32>
    %75 = vector.shape_cast %9 : vector<9x8x8xbf16> to vector<72x8xbf16>
    %c2 = arith.constant 2 : index
    %c0_37 = arith.constant 0 : index
    %c0_38 = arith.constant 0 : index
    %76 = vector.load %arg6[%c2, %c0_37, %c0_38] : memref<3x8x128xbf16, #tpu.memory_space<vmem>>, vector<1x8x128xbf16>
    %77 = vector.shape_cast %76 : vector<1x8x128xbf16> to vector<8x128xbf16>
    %cst_39 = arith.constant dense<0.000000e+00> : vector<72x128xf32>
    %78 = tpu.matmul %75, %77, %cst_39 {dimension_numbers = #tpu.dot_dimension_numbers<[1], [0], [0], [1], [0, 0, 1, 1], [], []>} : vector<72x8xbf16>, vector<8x128xbf16>, vector<72x128xf32> -> vector<72x128xf32>
    %79 = arith.addf %74, %78 : vector<72x128xf32>
    %80 = vector.extract_strided_slice %9 {offsets = [0, 0, 0], sizes = [9, 8, 4], strides = [1, 1, 1]} : vector<9x8x8xbf16> to vector<9x8x4xbf16>
    %81 = vector.shape_cast %80 : vector<9x8x4xbf16> to vector<72x4xbf16>
    %82 = vector.extract_strided_slice %81 {offsets = [1, 0], sizes = [71, 4], strides = [1, 1]} : vector<72x4xbf16> to vector<71x4xbf16>
    %83 = vector.extract_strided_slice %81 {offsets = [0, 0], sizes = [1, 4], strides = [1, 1]} : vector<72x4xbf16> to vector<1x4xbf16>
    %84 = tpu.concatenate %82, %83 in 0 : vector<71x4xbf16>, vector<1x4xbf16> -> vector<72x4xbf16>
    %85 = vector.extract_strided_slice %11 {offsets = [0, 2, 0], sizes = [9, 1, 4], strides = [1, 1, 1]} : vector<9x3x4xbf16> to vector<9x1x4xbf16>
    %86 = vector.shape_cast %85 : vector<9x1x4xbf16> to vector<9x4xbf16>
    %87 = vector.shape_cast %86 : vector<9x4xbf16> to vector<9x1x4xbf16>
    %88 = vector.shape_cast %87 : vector<9x1x4xbf16> to vector<9x1x4xbf16>
    %89 = vector.broadcast %88 : vector<9x1x4xbf16> to vector<9x8x4xbf16>
    %90 = vector.shape_cast %89 : vector<9x8x4xbf16> to vector<72x4xbf16>
    %91 = arith.select %30, %90, %84 : vector<72x4xi1>, vector<72x4xbf16>
    %c2_40 = arith.constant 2 : index
    %c0_41 = arith.constant 0 : index
    %c0_42 = arith.constant 0 : index
    %92 = vector.load %arg7[%c2_40, %c0_41, %c0_42] : memref<3x4x128xbf16, #tpu.memory_space<vmem>>, vector<1x4x128xbf16>
    %93 = vector.shape_cast %92 : vector<1x4x128xbf16> to vector<4x128xbf16>
    %cst_43 = arith.constant dense<0.000000e+00> : vector<72x128xf32>
    %94 = tpu.matmul %91, %93, %cst_43 {dimension_numbers = #tpu.dot_dimension_numbers<[1], [0], [0], [1], [0, 0, 1, 1], [], []>} : vector<72x4xbf16>, vector<4x128xbf16>, vector<72x128xf32> -> vector<72x128xf32>
    %95 = arith.addf %79, %94 : vector<72x128xf32>
    %96 = vector.shape_cast %95 : vector<72x128xf32> to vector<9x8x128xf32>
    %c0_44 = arith.constant 0 : index
    %c0_45 = arith.constant 0 : index
    %c0_46 = arith.constant 0 : index
    %c0_47 = arith.constant 0 : index
    %97 = vector.load %arg9[%c0_44, %c0_45, %c0_46, %c0_47] : memref<1x9x8x128xf32, #tpu.memory_space<vmem>>, vector<1x9x8x128xf32>
    %98 = vector.shape_cast %97 : vector<1x9x8x128xf32> to vector<9x8x128xf32>
    %99 = vector.shape_cast %96 : vector<9x8x128xf32> to vector<1x9x8x128xf32>
    tpu.vector_store %arg9[%c0_44, %c0_45, %c0_46, %c0_47], %99 {strides = array<i32>} : memref<1x9x8x128xf32, #tpu.memory_space<vmem>>, vector<1x9x8x128xf32>,
    return
  }
  func.func @transform_0(%arg0: i32, %arg1: i32, %arg2: i32) -> (i32, i32, i32, i32, i32) {
    %c0_i32 = arith.constant 0 : i32
    %c0_i32_0 = arith.constant 0 : i32
    %c0_i32_1 = arith.constant 0 : i32
    %c0_i32_2 = arith.constant 0 : i32
    return %arg0, %arg2, %c0_i32, %c0_i32_0, %c0_i32_1 : i32, i32, i32, i32, i32
  }
  func.func @transform_1(%arg0: i32, %arg1: i32, %arg2: i32) -> (i32, i32, i32, i32, i32) {
    %c1_i32 = arith.constant 1 : i32
    %0 = arith.addi %arg2, %c1_i32 : i32
    %c9_i32 = arith.constant 9 : i32
    %1 = arith.muli %0, %c9_i32 : i32
    %c0_i32 = arith.constant 0 : i32
    %c0_i32_0 = arith.constant 0 : i32
    %c0_i32_1 = arith.constant 0 : i32
    %c0_i32_2 = arith.constant 0 : i32
    return %arg0, %1, %c0_i32, %c0_i32_0, %c0_i32_1 : i32, i32, i32, i32, i32
  }
  func.func @transform_2(%arg0: i32, %arg1: i32, %arg2: i32) -> (i32, i32, i32, i32) {
    %c0_i32 = arith.constant 0 : i32
    %c0_i32_0 = arith.constant 0 : i32
    %c0_i32_1 = arith.constant 0 : i32
    return %arg0, %arg2, %c0_i32, %c0_i32_0 : i32, i32, i32, i32
  }
  func.func @transform_3(%arg0: i32, %arg1: i32, %arg2: i32) -> (i32, i32, i32) {
    %c0_i32 = arith.constant 0 : i32
    %c0_i32_0 = arith.constant 0 : i32
    %c0_i32_1 = arith.constant 0 : i32
    return %c0_i32, %c0_i32_0, %arg1 : i32, i32, i32
  }
  func.func @transform_4(%arg0: i32, %arg1: i32, %arg2: i32) -> (i32, i32, i32) {
    %c0_i32 = arith.constant 0 : i32
    %c0_i32_0 = arith.constant 0 : i32
    %c0_i32_1 = arith.constant 0 : i32
    return %c0_i32, %c0_i32_0, %arg1 : i32, i32, i32
  }
  func.func @transform_5(%arg0: i32, %arg1: i32, %arg2: i32) -> (i32, i32) {
    %c0_i32 = arith.constant 0 : i32
    %c0_i32_0 = arith.constant 0 : i32
    return %c0_i32, %arg1 : i32, i32
  }
  func.func @transform_6(%arg0: i32, %arg1: i32, %arg2: i32) -> (i32, i32, i32, i32) {
    %c0_i32 = arith.constant 0 : i32
    %c0_i32_0 = arith.constant 0 : i32
    return %arg0, %arg2, %c0_i32, %arg1 : i32, i32, i32, i32
  }
}

</mosaic_0001>

<bundles_post_ra>
// kernel: downsample_conv2d.1
= control target key start
LH: loop header
LB: loop body
LE: loop exit
PB: predicated region body
PF: predicated region fallthrough
CT: control target
= control target key end

     0   :  { %s2101_s21 = smov 0   ;;  %s2103_s22 = smov 0   ;;  %s2690_s0 = inlined_call_operand.vmem [shape: bf16[2,10,2,9,8], index: 0, kind: input, shape index: {}, may-alias: {0,1}]   ;;  %s2691_s1 = inlined_call_operand.vmem [shape: bf16[2,10,2,9,8], index: 1, kind: input, shape index: {}, may-alias: {0,1}]   ;;  %s2692_s2 = inlined_call_operand.vmem [shape: bf16[2,9,3,4], index: 2, kind: input, shape index: {}]   ;;  %s2693_s3 = inlined_call_operand.vmem [shape: bf16[3,8,128], index: 3, kind: input, shape index: {}]   ;;  %s2694_s4 = inlined_call_operand.vmem [shape: bf16[3,4,128], index: 4, kind: input, shape index: {}]   ;;  %s2695_s5 = inlined_call_operand.vmem [shape: f32[1,128], index: 5, kind: input, shape index: {}]   ;;  %s2696_s6 = inlined_call_operand.vmem [shape: f32[2,9,8,128], index: 6, kind: output, shape index: {}]  }
   0x1   :  { %s2105_s23 = smov 0   ;;  %s2107_s24 = smov 0  }
   0x2   :  { %s2109_s25 = smov 0  }
   0x3 LB: > { %s35_s26 = sadd.s32 1, %s2056_s24  ;;  %p51_p1 = scmp.ne.s32.totalorder %s2048_s22, %s2044_s21  ;;  %s2060_s25 = sphi %s2109_s25, %s16_s25   ;;  %s2056_s24 = sphi %s2107_s24, %s2724_s24   ;;  %s2052_s23 = sphi %s2105_s23, %s2723_s23   ;;  %s2048_s22 = sphi %s2103_s22, %s2722_s22   ;;  %s2044_s21 = sphi %s2101_s21, %s2721_s21  }
   0x4   : > { %p37_p0 = scmp.ge.s32.totalorder %s35_s26, 2  ;;  %p52_p2 = scmp.eq.s32.totalorder %s2060_s25, 0 }
   0x5   : > { %s44_s28 = sadd.s32 1, %s2048_s22  ;;  %p1850_p5 = scmp.ge.s32.totalorder %s2060_s25, 2 }
   0x6   : > { %s2726_s26 = smov (%p37_p0, %s35_s26), 0  ;;  %p53_p3 = por %p52_p2, %p51_p1 }
   0x7   : > { %s39_s27 = ssub.s32 %s2056_s24, %s2726_s26  ;;  %265 = sbr.rel (%p1850_p5) target bundleno = 36 (0x24), region = 28 }
   0x8   : > { %p42_p4 = scmp.eq.s32.totalorder %s39_s27, 0 }
   0xa   : > { %s2136_s29 = scalar_select %p42_p4, %s2048_s22, %s44_s28  }
   0xc   : > { %268 = sbr.rel (!%p53_p3) target bundleno = 36 (0x24), region = 32  ;;  %s270_s30 = sand.u32 (%p53_p3), 1, %s2048_s22  }
   0xd   : > { %s1927_s7 = smul.u32 (%p53_p3), 160, %s2056_s24  ;;  %s2148_s13 = smov (%p53_p3), 0  }
   0xe   : > { %s1926_s8 = smul.u32 (%p53_p3), 72, %s270_s30 }
   0xf   : > { %s2144_s11 = scalar_lea.vmem (%p53_p3), %s2690_s0, %s1927_s7  }
  0x10   : > { %s2146_s12 = scalar_lea.vmem (%p53_p3), [#allocation2], %s1926_s8  }
  0x11 LB: >> { %v306_v0 = vld [vmem:[%s2144_s11] sm:$0xf]  ;;  %v308_v1 = vld [vmem:[%s2144_s11 + $0x8] sm:$0xf]  ;;  %v310_v2 = vld [vmem:[%s2144_s11 + $0x10] sm:$0xf]  ;;  %s2064_s13 = sphi %s2148_s13, %s300_s13  }
  0x12   : >> { %307 = vst [vmem:[%s2146_s12] sm:$0xf] %v306_v0  ;;  %v312_v3 = vld [vmem:[%s2144_s11 + $0x18] sm:$0xf]  ;;  %v314_v4 = vld [vmem:[%s2144_s11 + $0x20] sm:$0xf]  ;;  %s300_s13 = sadd.s32 1, %s2064_s13  }
  0x13   : >> { %309 = vst [vmem:[%s2146_s12 + $0x4] sm:$0xf] %v308_v1  ;;  %v316_v5 = vld [vmem:[%s2144_s11 + $0x28] sm:$0xf]  ;;  %v318_v6 = vld [vmem:[%s2144_s11 + $0x30] sm:$0xf] }
  0x14   : >> { %311 = vst [vmem:[%s2146_s12 + $0x8] sm:$0xf] %v310_v2  ;;  %v320_v7 = vld [vmem:[%s2144_s11 + $0x38] sm:$0xf]  ;;  %v322_v8 = vld [vmem:[%s2144_s11 + $0x40] sm:$0xf] }
  0x15   : >> { %313 = vst [vmem:[%s2146_s12 + $0xc] sm:$0xf] %v312_v3  ;;  %v324_v9 = vld [vmem:[%s2144_s11 + $0x48] sm:$0xf]  ;;  %v326_v10 = vld [vmem:[%s2144_s11 + $0x50] sm:$0xf] }
  0x16   : >> { %315 = vst [vmem:[%s2146_s12 + $0x10] sm:$0xf] %v314_v4  ;;  %v328_v11 = vld [vmem:[%s2144_s11 + $0x58] sm:$0xf]  ;;  %v330_v12 = vld [vmem:[%s2144_s11 + $0x60] sm:$0xf] }
  0x17   : >> { %317 = vst [vmem:[%s2146_s12 + $0x14] sm:$0xf] %v316_v5  ;;  %v332_v13 = vld [vmem:[%s2144_s11 + $0x68] sm:$0xf]  ;;  %v334_v14 = vld [vmem:[%s2144_s11 + $0x70] sm:$0xf] }
  0x18   : >> { %319 = vst [vmem:[%s2146_s12 + $0x18] sm:$0xf] %v318_v6  ;;  %v336_v15 = vld [vmem:[%s2144_s11 + $0x78] sm:$0xf]  ;;  %v338_v16 = vld [vmem:[%s2144_s11 + $0x80] sm:$0xf] }
  0x19   : >> { %321 = vst [vmem:[%s2146_s12 + $0x1c] sm:$0xf] %v320_v7  ;;  %v340_v17 = vld [vmem:[%s2144_s11 + $0x88] sm:$0xf]  ;;  %p299_p6 = scmp.ge.s32.totalorder %s300_s13, 1 }
  0x1a   : >> { %323 = vst [vmem:[%s2146_s12 + $0x20] sm:$0xf] %v322_v8 }
  0x1b   : >> { %325 = vst [vmem:[%s2146_s12 + $0x24] sm:$0xf] %v324_v9 }
  0x1c   : >> { %327 = vst [vmem:[%s2146_s12 + $0x28] sm:$0xf] %v326_v10 }
  0x1d   : >> { %329 = vst [vmem:[%s2146_s12 + $0x2c] sm:$0xf] %v328_v11 }
  0x1e   : >> { %331 = vst [vmem:[%s2146_s12 + $0x30] sm:$0xf] %v330_v12 }
  0x1f   : >> { %333 = vst [vmem:[%s2146_s12 + $0x34] sm:$0xf] %v332_v13  ;;  %302 = sbr.rel (!%p299_p6) target bundleno = 17 (0x11), region = 155 }
  0x20   : >> { %335 = vst [vmem:[%s2146_s12 + $0x38] sm:$0xf] %v334_v14 }
  0x21   : >> { %337 = vst [vmem:[%s2146_s12 + $0x3c] sm:$0xf] %v336_v15 }
  0x22   : >> { %339 = vst [vmem:[%s2146_s12 + $0x40] sm:$0xf] %v338_v16 }
  0x23   : >> { %341 = vst [vmem:[%s2146_s12 + $0x44] sm:$0xf] %v340_v17 }
  0x24 PF: > { %p1858_p7 = scmp.ge.s32.totalorder %s2060_s25, 1  ;;  %p488_p8 = scmp.lt.s32.totalorder %s2060_s25, 3 }
  0x26   : > { %p489_p9 = pnand %p1858_p7, %p488_p8 }
  0x27   : > { %s495_s16 = sand.u32 (!%p489_p9), 1, %s2044_s21   ;;  %p570_p10 = scmp.lt.s32.totalorder (!%p489_p9), %s2052_s23, 1 }
  0x28   : > { %492 = sbr.rel (%p489_p9) target bundleno = 317 (0x13d), region = 88 }
  0x29   : > { %s1928_s17 = smul.u32 (!%p489_p9), 72, %s495_s16 }
  0x2b   : > { %s2204_s20 = scalar_lea.vmem (!%p489_p9), [#allocation2], %s1928_s17 }
  0x2d   : > { %v773_v18 = vld [vmem:[%s2693_s3] sm:$0xf]  ;;  %vm813_vm0 = vcmask 1043456   ;;  %vm1030_vm1 = vcmask 1041408   ;;  %v645_v22 = vlaneseq  ;;  %vm797_vm2 = vcmask 64512   ;;  %v2227_v32 = vld [vmem:[%s2204_s20 + $0x8] sm:$0xff]  }
  0x2e   : > { %v815_v19 = vsel %vm813_vm0, %v773_v18, 0  ;;  %v990_v20 = vld [vmem:[%s2694_s4] sm:$0x3]  ;;  %v2207_v23 = vld [vmem:[%s2204_s20 + $0x10] sm:$0xf]  ;;  %s2728_s23 = smov (!%p570_p10, %s2052_s23), 1  ;;  %v2241_v38 = vunpack.c.l.b16 %v2227_v32 }
  0x2f   : > { %1924 = vmatpush.bf16.msra.mxu2 %v815_v19  ;;  %824 = vmatpush.bf16.msra.mxu0 %v815_v19  ;;  %v1032_v21 = vsel %vm1030_vm1, %v990_v20, 0  ;;  %v2210_v24 = vld [vmem:[%s2204_s20 + $0x18] sm:$0xf]  ;;  %v2213_v25 = vld [vmem:[%s2204_s20 + $0x20] sm:$0xf]  ;;  %v2235_v34 = vshrl.u32 %v645_v22, 7  ;;  %v785_v35 = vunpack.c.l.b16 %v2207_v23 }
  0x30   : > { %1041 = vmatpush.bf16.msra.mxu1 %v1032_v21  ;;  %1925 = vmatpush.bf16.msra.mxu3 %v1032_v21  ;;  %v2216_v26 = vld [vmem:[%s2204_s20 + $0x28] sm:$0xf]  ;;  %v2219_v27 = vld [vmem:[%s2204_s20 + $0x30] sm:$0xf]  ;;  %v623_v28 = vld [vmem:[%s2204_s20 + $0x38] sm:$0xf]  ;;  %v786_v36 = vunpack.c.l.b16 %v2210_v24  ;;  %v787_v39 = vunpack.c.l.b16 %v2213_v25 }
  0x31   : > { %v789_v29 = vunpack.c.l.b16 %v2219_v27  ;;  %v790_v30 = vunpack.c.l.b16 %v623_v28  ;;  %v2224_v31 = vld [vmem:[%s2204_s20] sm:$0xff]   ;;  %v788_v40 = vunpack.c.l.b16 %v2216_v26  ;;  %s1930_s21 = smul.u32 18, %s2728_s23  ;;  %v647_v48 = vadd.s32 8, %v2235_v34  ;;  %v1922_v24 = vld [vmem:[%s2204_s20 + $0x28] sm:$0xf0] }
  0x32   : > { %v624_v33 = vld [vmem:[%s2204_s20 + $0x40] sm:$0xf]  ;;  %v783_v37 = vunpack.c.l.b16 %v2224_v31  ;;  %v2254_v46 = vpack.c.b16 %v786_v36, %v785_v35  ;;  %v659_v60 = vand.u32 7, %v2235_v34  ;;  %vm862_vm3 = vsmask.f32 7424  ;;  %s1932_s15 = smul.u32 160, %s2728_s23 }
  0x33   : > { %v795_v41 = vpack.c.b16 %v790_v30, %v789_v29  ;;  %v791_v42 = vunpack.c.l.b16 %v624_v33  ;;  %s2260_s30 = scalar_lea.vmem %s2692_s2, %s1930_s21  ;;  %v2267_v49 = vpack.c.b16 %v788_v40, %v787_v39  ;;  %v666_v1 = vand.u32 7, %v647_v48  ;;  %v1911_v33 = vld [vmem:[%s2694_s4 + $0x4] sm:$0x3]  ;;  %s1931_s27 = smul.u32 72, %s2728_s23 }
  0x34   : > { %v792_v43 = vpack.c.b16 %v2241_v38, %v783_v37  ;;  %v898_v44 = vpack.c.b16 %v783_v37, %v783_v37  ;;  %v2276_v58 = vld [vmem:[%s2260_s30] sm:$0x3]  ;;  %v2279_v59 = vld [vmem:[%s2260_s30 + $0x2] sm:$0x3]  ;;  %vm905_vm4 = vsmask.f32 3328 }
  0x35   : > { %1874 = vmatmul.msk.bf16.vlgmr.msra.gmra.mxu2 %vm797_vm2, %v795_v41  ;;  %v883_v45 = vshll.u32 %v795_v41, 16  ;;  %v887_v51 = vshrl.u32 %v795_v41, 16  ;;  %v796_v52 = vpack.c.b16 %v791_v42, %v791_v42  ;;  %v2273_v56 = vpack.c.b16 %v791_v42, %v790_v30  ;;  %v2294_v6 = vld [vmem:[%s2260_s30 + $0xc] sm:$0x3]  ;;  %v2305_v11 = vld [vmem:[%s2260_s30 + $0xe] sm:$0x3]  ;;  %vm2388_vm14 = vmand %vm813_vm0, %vm905_vm4  ;;  %s2656_s7 = scalar_lea.vmem %s2696_s6, %s1931_s27 }
  0x36   : > { %1871 = vmatmul.msk.bf16.vlgmr.msra.gmra.mxu0 %vm797_vm2, %v792_v43  ;;  %v865_v47 = vshll.u32 %v792_v43, 16  ;;  %v863_v53 = vshrl.u32 %v792_v43, 16  ;;  %v2271_v55 = vshll.u32 %v898_v44, 16  ;;  %v876_v62 = vshll.u32 %v2267_v49, 16  ;;  %v1905_v30 = vld [vmem:[%s2693_s3 + $0x8] sm:$0xf] }
  0x37   : > { %v2269_v50 = vrot.slane %v883_v45, 1  ;;  %v890_v57 = vshll.u32 %v796_v52, 16  ;;  %v894_v61 = vshrl.u32 %v796_v52, 16  ;;  %v869_v3 = vshll.u32 %v2254_v46, 16  ;;  %v1881_v45 = vld [vmem:[%s2693_s3 + $0x4] sm:$0xf] }
  0x38   : > { %v867_v54 = vrot.slane %v865_v47, 1  ;;  %v2287_v4 = vpack.i.b16 %v2276_v58, %v2276_v58  ;;  %v2291_v5 = vpack.i.b16 %v2279_v59, %v2279_v59  ;;  %v880_v7 = vshrl.u32 %v2267_v49, 16  ;;  %v1899_v47 = vld [vmem:[%s2694_s4 + $0x2] sm:$0x3]  ;;  %s1920_s16 = sadd.s32 144, %s1932_s15 }
  0x39   : > { %v889_v63 = vor.u32 %v887_v51, %v2269_v50  ;;  %v892_v0 = vrot.slane %v890_v57, 1  ;;  %v902_v8 = vrot.slane %v2271_v55, 5  ;;  %vm2300_vm5 = vcmp.eq.s32.totalorder %v659_v60, 7  ;;  %s578_s19 = scalar_lea.vmem %s2691_s1, %s1920_s16 }
  0x3a   : > { %v868_v2 = vor.u32 %v867_v54, %v863_v53  ;;  %vm2307_vm6 = vcmp.eq.s32.totalorder %v666_v1, 7  ;;  %v2311_v13 = vrot.slane %v869_v3, 1  ;;  %v911_v14 = vperm.slane %v2287_v4, 0  ;;  %vm2337_vm8 = vmpackc.low %vm2300_vm5, %vm2300_vm5 }
  0x3b   : > { %v2298_v9 = vor.u32 %v894_v61, %v892_v0  ;;  %v915_v15 = vperm.slane %v2291_v5, 0  ;;  %vm1014_vm7 = vcmask 31744   ;;  %v652_v16 = vadd.s32 48, %v2235_v34  ;;  %vm2350_vm9 = vmpackc.low %vm2307_vm6, %vm2307_vm6 }
  0x3c   : > { %v653_v17 = vadd.s32 56, %v2235_v34  ;;  %v893_v18 = vsel %vm862_vm3, %v889_v63, %v892_v0  ;;  %v2320_v19 = vpack.i.b16 %v2294_v6, %v2294_v6  ;;  %v872_v20 = vsel %vm862_vm3, %v868_v2, %v2311_v13 }
  0x3d   : > { %v2326_v21 = vpack.i.b16 %v2305_v11, %v2305_v11  ;;  %v960_v22 = vunpack.c.l.b16 %v893_v18  ;;  %v961_v28 = vunpack.c.h.b16 %v893_v18  ;;  %v954_v41 = vunpack.c.l.b16 %v872_v20  ;;  %v2376_v18 = vld [vmem:[%s2260_s30 + $0x4] sm:$0x3] }
  0x3e   : > { %v955_v42 = vunpack.c.h.b16 %v872_v20  ;;  %v701_v43 = vand.u32 7, %v652_v16  ;;  %v708_v44 = vand.u32 7, %v653_v17  ;;  %v935_v51 = vperm.slane %v2320_v19, 0  ;;  %v2379_v20 = vld [vmem:[%s2260_s30 + $0x6] sm:$0x3] }
  0x3f   : > { %v939_v53 = vperm.slane %v2326_v21, 0  ;;  %v969_v54 = vpack.c.b16 %v960_v22, %v960_v22  ;;  %v970_v57 = vpack.c.b16 %v961_v28, %v961_v28  ;;  %v963_v60 = vpack.c.b16 %v954_v41, %v954_v41 }
  0x40   : > { %v964_v61 = vpack.c.b16 %v955_v42, %v955_v42  ;;  %vm769_vm10 = vcmp.eq.s32.totalorder %v701_v43, 7  ;;  %vm770_vm11 = vcmp.eq.s32.totalorder %v708_v44, 7  ;;  %v1386_v0 = vsel %vm813_vm0, %v1905_v30, 0 }
  0x41   : > { %vm2356_vm12 = vmpackc.low %vm769_vm10, %vm769_vm10  ;;  %v1559_v1 = vsel %vm1030_vm1, %v1911_v33, 0  ;;  %v1117_v2 = vsel %vm813_vm0, %v1881_v45, 0  ;;  %v1317_v3 = vsel %vm1030_vm1, %v1899_v47, 0  ;;  %v981_v10 = vsel %vm2337_vm8, %v911_v14, %v963_v60  ;;  %1395 = vmatpush.bf16.msrb.mxu0 %v1386_v0 }
  0x42   : > { %v982_v12 = vsel %vm2350_vm9, %v915_v15, %v964_v61  ;;  %vm2369_vm13 = vmpackc.low %vm770_vm11, %vm770_vm11  ;;  %v987_v17 = vsel %vm2356_vm12, %v935_v51, %v969_v54  ;;  %v1000_v22 = vunpack.c.l.b16 %v981_v10  ;;  %1568 = vmatpush.bf16.msrb.mxu1 %v1559_v1  ;;  %1126 = vmatpush.bf16.msrb.mxu2 %v1117_v2  ;;  %v649_v41 = vadd.s32 24, %v2235_v34 }
  0x43   : > { %v1001_v28 = vunpack.c.l.b16 %v982_v12  ;;  %v988_v14 = vsel %vm2369_vm13, %v939_v53, %v970_v57  ;;  %v1006_v15 = vunpack.c.l.b16 %v987_v17  ;;  %1326 = vmatpush.bf16.msrb.mxu3 %v1317_v3  ;;  %v873_v43 = vshrl.u32 %v2254_v46, 16  ;;  %v2405_v53 = vld [vmem:[%s2260_s30 + $0x10] sm:$0x3] }
  0x44   : > { %v1007_v33 = vunpack.c.l.b16 %v988_v14  ;;  %v878_v45 = vrot.slane %v876_v62, 1  ;;  %v2398_v47 = vpack.i.b16 %v2376_v18, %v2376_v18  ;;  %v2402_v51 = vpack.i.b16 %v2379_v20, %v2379_v20 }
  0x45   : > { %1875 = vmatmul.msk.bf16.gmra.mxu2 %vm797_vm2, %v796_v52  ;;  %v648_v52 = vadd.s32 16, %v2235_v34  ;;  %v1009_v44 = vpack.c.b16 %v1001_v28, %v1000_v22  ;;  %v680_v57 = vand.u32 7, %v649_v41  ;;  %v875_v60 = vor.u32 %v873_v43, %v2311_v13 }
  0x46   : > { %1872 = vmatmul.msk.bf16.gmra.mxu0 %vm797_vm2, %v2254_v46  ;;  %v1012_v54 = vpack.c.b16 %v1007_v33, %v1006_v15  ;;  %v919_v46 = vperm.slane %v2398_v47, 0  ;;  %v923_v62 = vperm.slane %v2402_v51, 0  ;;  %v654_v61 = vadd.s32 64, %v2235_v34 }
  0x47   : > { %v673_v42 = vand.u32 7, %v648_v52  ;;  %1876 = vmatmul.msk.bf16.vlgmr.msra.gmra.mxu1 %vm1014_vm7, %v1009_v44  ;;  %v907_v0 = vsel %vm2388_vm14, %v2298_v9, %v902_v8  ;;  %vm766_vm0 = vcmp.eq.s32.totalorder %v680_v57, 7  ;;  %v879_v1 = vsel %vm862_vm3, %v875_v60, %v878_v45  ;;  %v2451_v44 = vld [vmem:[%s2260_s30 + $0x8] sm:$0x3] }
  0x48   : > { %1879 = vmatmul.msk.bf16.vlgmr.msra.gmra.mxu3 %vm1014_vm7, %v1012_v54  ;;  %v2421_v13 = vpack.i.b16 %v2405_v53, %v2405_v53  ;;  %v962_v2 = vunpack.c.l.b16 %v907_v0  ;;  %v956_v10 = vunpack.c.l.b16 %v879_v1  ;;  %v957_v55 = vunpack.c.h.b16 %v879_v1  ;;  %vm2430_vm4 = vmpackc.low %vm766_vm0, %vm766_vm0  ;;  %v2454_v54 = vld [vmem:[%s2260_s30 + $0xa] sm:$0x3]  ;;  %v1921_v0 = vld [vmem:[%s2204_s20 + $0x18] sm:$0xf0] }
  0x49   : > { %vm765_vm15 = vcmp.eq.s32.totalorder %v673_v42, 7  ;;  %v715_v12 = vand.u32 7, %v654_v61  ;;  %v2428_v8 = vunpack.c.h.b16 %v2224_v31  ;;  %v1088_v22 = vunpack.c.h.b16 %v2227_v32 }
  0x4a   : > { %vm2423_vm1 = vmpackc.low %vm765_vm15, %vm765_vm15  ;;  %v943_v17 = vperm.slane %v2421_v13, 0  ;;  %v971_v52 = vpack.c.b16 %v962_v2, %v962_v2  ;;  %v965_v28 = vpack.c.b16 %v956_v10, %v956_v10  ;;  %v966_v14 = vpack.c.b16 %v957_v55, %v957_v55 }
  0x4b   : > { %vm771_vm5 = vcmp.eq.s32.totalorder %v715_v12, 7  ;;  %v1096_v31 = vpack.c.b16 %v1088_v22, %v2428_v8  ;;  %v882_v33 = vor.u32 %v880_v7, %v878_v45  ;;  %v650_v43 = vadd.s32 32, %v2235_v34 }
  0x4c   : > { %vm2436_vm6 = vmpackc.low %vm771_vm5, %vm771_vm5  ;;  %v983_v41 = vsel %vm2423_vm1, %v919_v46, %v965_v28  ;;  %v984_v32 = vsel %vm2430_vm4, %v923_v62, %v966_v14  ;;  %v651_v57 = vadd.s32 40, %v2235_v34  ;;  %v1884_v46 = vld [vmem:[%s2204_s20 + $0x14] sm:$0xf]  ;;  %v1203_v62 = vshrl.u32 %v2276_v58, 16 }
  0x4d   : > { %v989_v42 = vsel %vm2436_vm6, %v943_v17, %v971_v52  ;;  %v1002_v60 = vunpack.c.l.b16 %v983_v41  ;;  %v1003_v61 = vunpack.c.l.b16 %v984_v32  ;;  %v1163_v45 = vshll.u32 %v1096_v31, 16  ;;  %v1888_v52 = vld [vmem:[%s2204_s20 + $0x24] sm:$0xf] }
  0x4e   : > { %v1008_v7 = vunpack.c.l.b16 %v989_v42  ;;  %v1207_v1 = vshrl.u32 %v2279_v59, 16  ;;  %v1161_v2 = vshrl.u32 %v1096_v31, 16  ;;  %v886_v10 = vsel %vm862_vm3, %v882_v33, %v2269_v50 }
  0x4f   : > { %v2467_v34 = vpack.c.b16 %v787_v39, %v786_v36  ;;  %v1165_v55 = vrot.slane %v1163_v45, 1  ;;  %v687_v12 = vand.u32 7, %v650_v43  ;;  %v694_v17 = vand.u32 7, %v651_v57 }
  0x50   : > { %v2472_v58 = vpack.i.b16 %v2451_v44, %v2451_v44  ;;  %v2476_v59 = vpack.i.b16 %v2454_v54, %v2454_v54  ;;  %v1885_v50 = vor.u32 %v1921_v0, %v1884_v46  ;;  %v1010_v22 = vpack.c.b16 %v1003_v61, %v1002_v60 }
  0x51   : > { %v1013_v25 = vpack.c.b16 %v1008_v7, %v1008_v7  ;;  %v958_v36 = vunpack.c.l.b16 %v886_v10  ;;  %v959_v39 = vunpack.c.h.b16 %v886_v10  ;;  %v1166_v28 = vor.u32 %v1165_v55, %v1161_v2 }
  0x52   : > { %v1167_v14 = vshll.u32 %v1885_v50, 16  ;;  %v1208_v33 = vpack.i.b16 %v1207_v1, %v1207_v1  ;;  %v1436_v41 = vshll.u32 %v2467_v34, 16  ;;  %vm767_vm10 = vcmp.eq.s32.totalorder %v687_v12, 7 }
  0x53   : > { %v1365_v32 = vpack.c.b16 %v785_v35, %v2241_v38  ;;  %v2486_v42 = vor.u32 %v1922_v24, %v1888_v52  ;;  %vm768_vm11 = vcmp.eq.s32.totalorder %v694_v17, 7  ;;  %v927_v43 = vperm.slane %v2472_v58, 0  ;;  %vm2492_vm15 = vmpackc.low %vm767_vm10, %vm767_vm10 }
  0x54   : > { %v1169_v57 = vrot.slane %v1167_v14, 1  ;;  %v967_v60 = vpack.c.b16 %v958_v36, %v958_v36  ;;  %v968_v61 = vpack.c.b16 %v959_v39, %v959_v39  ;;  %v1171_v7 = vshrl.u32 %v1885_v50, 16  ;;  %vm2498_vm0 = vmpackc.low %vm768_vm11, %vm768_vm11 }
  0x55   : > { %1894 = vmatmul.msk.bf16.vlgmr.msrb.gmra.mxu2 %vm797_vm2, %v1096_v31  ;;  %v1204_v31 = vpack.i.b16 %v1203_v62, %v1203_v62  ;;  %v1432_v45 = vshll.u32 %v1365_v32, 16  ;;  %v1210_v0 = vperm.slane %v1208_v33, 0  ;;  %v1174_v62 = vshll.u32 %v2486_v42, 16  ;;  %v1923_v33 = vld [vmem:[%s2204_s20 + $0x38] sm:$0xf0] }
  0x56   : > { %1873 = vmatmul.msk.bf16.gmra.mxu0 %vm797_vm2, %v2267_v49  ;;  %v931_v49 = vperm.slane %v2476_v59, 0  ;;  %v1170_v23 = vsel %vm862_vm3, %v1166_v28, %v1169_v57  ;;  %v1430_v55 = vshrl.u32 %v1365_v32, 16  ;;  %v2506_v17 = vpack.c.b16 %v789_v29, %v788_v40 }
  0x57   : > { %1877 = vmatmul.msk.bf16.gmra.mxu1 %vm1014_vm7, %v1010_v22  ;;  %v1206_v35 = vperm.slane %v1204_v31, 0  ;;  %v1240_v2 = vunpack.c.l.b16 %v1170_v23  ;;  %v1241_v10 = vunpack.c.h.b16 %v1170_v23  ;;  %v1434_v12 = vrot.slane %v1432_v45, 1  ;;  %v1892_v31 = vld [vmem:[%s2204_s20 + $0x34] sm:$0xf] }
  0x58   : > { %1880 = vmatmul.msk.bf16.gmra.mxu3 %vm1014_vm7, %v1013_v25  ;;  %v985_v22 = vsel %vm2492_vm15, %v927_v43, %v967_v60  ;;  %v986_v25 = vsel %vm2498_vm0, %v931_v49, %v968_v61  ;;  %v1173_v36 = vor.u32 %v1171_v7, %v1169_v57  ;;  %v1176_v39 = vrot.slane %v1174_v62, 1 }
  0x59   : > { %v1249_v52 = vpack.c.b16 %v1240_v2, %v1240_v2  ;;  %v1250_v24 = vpack.c.b16 %v1241_v10, %v1241_v10  ;;  %v1435_v14 = vor.u32 %v1434_v12, %v1430_v55  ;;  %v1438_v27 = vrot.slane %v1436_v41, 1 }
  0x5a   : > { %v1211_v29 = vshrl.u32 %v2376_v18, 16  ;;  %v1215_v40 = vshrl.u32 %v2379_v20, 16  ;;  %v1004_v43 = vunpack.c.l.b16 %v985_v22  ;;  %v1005_v60 = vunpack.c.l.b16 %v986_v25  ;;  %v1870_v22 = vld [vmem:[%s2204_s20 + $0x44] sm:$0xf] }
  0x5b   : > { %v1267_v28 = vsel %vm2337_vm8, %v1206_v35, %v1249_v52  ;;  %v1268_v26 = vsel %vm2350_vm9, %v1210_v0, %v1250_v24  ;;  %v1177_v57 = vsel %vm862_vm3, %v1173_v36, %v1176_v39  ;;  %v1443_v61 = vshll.u32 %v2506_v17, 16 }
  0x5c   : > { %v1287_v45 = vunpack.c.l.b16 %v1267_v28  ;;  %v1288_v49 = vunpack.c.l.b16 %v1268_v26  ;;  %v1439_v7 = vsel %vm862_vm3, %v1435_v14, %v1438_v27  ;;  %v2523_v23 = vor.u32 %v1923_v33, %v1892_v31 }
  0x5d   : > { %v1212_v18 = vpack.i.b16 %v1211_v29, %v1211_v29  ;;  %v1216_v41 = vpack.i.b16 %v1215_v40, %v1215_v40  ;;  %v1011_v20 = vpack.c.b16 %v1005_v60, %v1004_v43  ;;  %v1242_v35 = vunpack.c.l.b16 %v1177_v57 }
  0x5e   : > { %v1243_v0 = vunpack.c.h.b16 %v1177_v57  ;;  %v1447_v62 = vshrl.u32 %v2506_v17, 16  ;;  %v1296_v2 = vpack.c.b16 %v1288_v49, %v1287_v45  ;;  %v1482_v10 = vunpack.c.l.b16 %v1439_v7 }
  0x5f   : > { %v1483_v55 = vunpack.c.h.b16 %v1439_v7  ;;  %v1445_v12 = vrot.slane %v1443_v61, 1  ;;  %v1450_v52 = vshll.u32 %v2273_v56, 16  ;;  %v1196_v24 = vpack.c.b16 %v2428_v8, %v2428_v8 }
  0x60   : > { %v1178_v25 = vshrl.u32 %v2486_v42, 16  ;;  %v1214_v36 = vperm.slane %v1212_v18, 0  ;;  %v1472_v28 = vperm.slane %v2287_v4, 1  ;;  %v1251_v26 = vpack.c.b16 %v1242_v35, %v1242_v35 }
  0x61   : > { %v1252_v14 = vpack.c.b16 %v1243_v0, %v1243_v0  ;;  %v1185_v29 = vshrl.u32 %v2523_v23, 16  ;;  %v1095_v40 = vunpack.c.l.b16 %v1870_v22  ;;  %v1473_v8 = vperm.slane %v2291_v5, 1 }
  0x62   : > { %v1491_v31 = vpack.c.b16 %v1482_v10, %v1482_v10  ;;  %v1492_v33 = vpack.c.b16 %v1483_v55, %v1483_v55  ;;  %v1440_v43 = vshrl.u32 %v2467_v34, 16  ;;  %v1449_v49 = vor.u32 %v1447_v62, %v1445_v12 }
  0x63   : > { %v2540_v45 = vpack.c.b16 %v1095_v40, %v1095_v40  ;;  %v2542_v4 = vrot.slane %v1450_v52, 1  ;;  %v1198_v57 = vshll.u32 %v1196_v24, 16  ;;  %v1269_v61 = vsel %vm2423_vm1, %v1214_v36, %v1251_v26 }
  0x64   : > { %v1510_v35 = vsel %vm2350_vm9, %v1473_v8, %v1492_v33  ;;  %v1442_v0 = vor.u32 %v1440_v43, %v1438_v27  ;;  %v1219_v62 = vshrl.u32 %v2451_v44, 16  ;;  %v1227_v10 = vshrl.u32 %v2294_v6, 16 }
  0x65   : > { %1895 = vmatmul.msk.bf16.gmra.mxu2 %vm797_vm2, %v1885_v50  ;;  %v1181_v50 = vshll.u32 %v2523_v23, 16  ;;  %v1188_v5 = vshll.u32 %v2540_v45, 16  ;;  %v1231_v55 = vshrl.u32 %v2305_v11, 16  ;;  %v1289_v52 = vunpack.c.l.b16 %v1269_v61 }
  0x66   : > { %1906 = vmatmul.msk.bf16.vlgmr.msrb.gmra.mxu0 %vm797_vm2, %v1365_v32  ;;  %v1218_v32 = vperm.slane %v1216_v41, 0  ;;  %v1180_v41 = vor.u32 %v1178_v25, %v1176_v39  ;;  %v2559_v37 = vsel %vm862_vm3, %v1449_v49, %v2542_v4  ;;  %v1530_v22 = vunpack.c.l.b16 %v1510_v35 }
  0x67   : > { %1878 = vmatmul.msk.bf16.gmra.mxu1 %vm1014_vm7, %v1011_v20  ;;  %v1183_v60 = vrot.slane %v1181_v50, 1  ;;  %v1509_v20 = vsel %vm2337_vm8, %v1472_v28, %v1491_v31  ;;  %v1223_v50 = vshrl.u32 %v2454_v54, 16  ;;  %v1228_v27 = vpack.i.b16 %v1227_v10, %v1227_v10 }
  0x68   : > { %1900 = vmatmul.msk.bf16.vlgmr.msrb.gmra.mxu3 %vm1014_vm7, %v1296_v2  ;;  %v1270_v7 = vsel %vm2430_vm4, %v1218_v32, %v1252_v14  ;;  %v1190_v2 = vrot.slane %v1188_v5, 1  ;;  %v1529_v39 = vunpack.c.l.b16 %v1509_v20  ;;  %v1446_v44 = vsel %vm862_vm3, %v1442_v0, %v1445_v12 }
  0x69   : > { %v1187_v18 = vor.u32 %v1185_v29, %v1183_v60  ;;  %v1290_v24 = vunpack.c.l.b16 %v1270_v7  ;;  %v1232_v25 = vpack.i.b16 %v1231_v55, %v1231_v55  ;;  %v1200_v11 = vrot.slane %v1198_v57, 5 }
  0x6a   : > { %v1184_v32 = vsel %vm862_vm3, %v1180_v41, %v1183_v60  ;;  %v1220_v28 = vpack.i.b16 %v1219_v62, %v1219_v62  ;;  %v1230_v54 = vperm.slane %v1228_v27, 0  ;;  %v1192_v26 = vshrl.u32 %v2540_v45, 16 }
  0x6b   : > { %v1191_v48 = vsel %vm862_vm3, %v1187_v18, %v1190_v2  ;;  %v1234_v14 = vperm.slane %v1232_v25, 0  ;;  %v1297_v8 = vpack.c.b16 %v1290_v24, %v1289_v52  ;;  %v1538_v31 = vpack.c.b16 %v1530_v22, %v1529_v39 }
  0x6c   : > { %v1246_v6 = vunpack.c.l.b16 %v1191_v48  ;;  %v1247_v36 = vunpack.c.h.b16 %v1191_v48  ;;  %v1224_v12 = vpack.i.b16 %v1223_v50, %v1223_v50  ;;  %v1484_v33 = vunpack.c.l.b16 %v1446_v44  ;;  %v635_v50 = vld [vmem:[%s578_s19] sm:$0xf] }
  0x6d   : > { %v1485_v43 = vunpack.c.h.b16 %v1446_v44  ;;  %v1194_v60 = vor.u32 %v1192_v26, %v1190_v2  ;;  %v1244_v57 = vunpack.c.l.b16 %v1184_v32  ;;  %v1245_v61 = vunpack.c.h.b16 %v1184_v32 }
  0x6e   : > { %v1255_v29 = vpack.c.b16 %v1246_v6, %v1246_v6  ;;  %v1256_v40 = vpack.c.b16 %v1247_v36, %v1247_v36  ;;  %v1474_v5 = vperm.slane %v2398_v47, 1  ;;  %v1475_v41 = vperm.slane %v2402_v51, 1 }
  0x6f   : > { %v1493_v35 = vpack.c.b16 %v1484_v33, %v1484_v33  ;;  %v1494_v0 = vpack.c.b16 %v1485_v43, %v1485_v43  ;;  %v1202_v62 = vsel %vm2388_vm14, %v1194_v60, %v1200_v11  ;;  %v1235_v2 = vshrl.u32 %v2405_v53, 16 }
  0x70   : > { %v1273_v49 = vsel %vm2356_vm12, %v1230_v54, %v1255_v29  ;;  %v1226_v10 = vperm.slane %v1224_v12, 0  ;;  %v1253_v55 = vpack.c.b16 %v1244_v57, %v1244_v57  ;;  %v1254_v52 = vpack.c.b16 %v1245_v61, %v1245_v61 }
  0x71   : > { %v1293_v7 = vunpack.c.l.b16 %v1273_v49  ;;  %v1248_v24 = vunpack.c.l.b16 %v1202_v62  ;;  %v1236_v39 = vpack.i.b16 %v1235_v2, %v1235_v2  ;;  %v1511_v47 = vsel %vm2423_vm1, %v1474_v5, %v1493_v35 }
  0x72   : > { %v1512_v51 = vsel %vm2430_vm4, %v1475_v41, %v1494_v0  ;;  %v1364_v27 = vunpack.c.l.b16 %v635_v50  ;;  %v1272_v53 = vsel %vm2498_vm0, %v1226_v10, %v1254_v52  ;;  %v1465_v6 = vpack.c.b16 %v2241_v38, %v2241_v38 }
  0x73   : > { %v1257_v22 = vpack.c.b16 %v1248_v24, %v1248_v24  ;;  %v1238_v48 = vperm.slane %v1236_v39, 0  ;;  %v1531_v36 = vunpack.c.l.b16 %v1511_v47  ;;  %v1532_v3 = vunpack.c.l.b16 %v1512_v51  ;;  %v2637_v24 = vld [vmem:[%s2695_s5] ss:$0 sm:$0xff] }
  0x74   : > { %v1292_v32 = vunpack.c.l.b16 %v1272_v53  ;;  %v1369_v9 = vpack.c.b16 %v1364_v27, %v1364_v27  ;;  %v1487_v29 = vunpack.c.h.b16 %v2559_v37  ;;  %v1479_v5 = vperm.slane %v2326_v21, 1 }
  0x75   : > { %1896 = vmatmul.msk.bf16.gmra.mxu2 %vm797_vm2, %v2486_v42  ;;  %v1274_v42 = vsel %vm2369_vm13, %v1234_v14, %v1256_v40  ;;  %v1275_v25 = vsel %vm2436_vm6, %v1238_v48, %v1257_v22  ;;  %v1539_v54 = vpack.c.b16 %v1532_v3, %v1531_v36  ;;  %v1486_v14 = vunpack.c.l.b16 %v2559_v37 }
  0x76   : > { %1907 = vmatmul.msk.bf16.gmra.mxu0 %vm797_vm2, %v2467_v34  ;;  %v1294_v18 = vunpack.c.l.b16 %v1274_v42  ;;  %v1222_v34 = vperm.slane %v1220_v28, 0  ;;  %v1467_v28 = vshll.u32 %v1465_v6, 16  ;;  %v1457_v40 = vshll.u32 %v1369_v9, 16 }
  0x77   : > { %1912 = vmatmul.msk.bf16.vlgmr.msrb.gmra.mxu1 %vm1014_vm7, %v1538_v31  ;;  %v1477_v31 = vperm.slane %v2476_v59, 1  ;;  %v1496_v12 = vpack.c.b16 %v1487_v29, %v1487_v29  ;;  %v1461_v43 = vshrl.u32 %v1369_v9, 16  ;;  %v1480_v42 = vperm.slane %v2421_v13, 1 }
  0x78   : > { %v1299_v20 = vpack.c.b16 %v1294_v18, %v1293_v7  ;;  %1901 = vmatmul.msk.bf16.gmra.mxu3 %vm1014_vm7, %v1297_v8  ;;  %v1271_v44 = vsel %vm2492_vm15, %v1222_v34, %v1253_v55  ;;  %v1469_v38 = vrot.slane %v1467_v28, 5  ;;  %v1476_v8 = vperm.slane %v2472_v58, 1 }
  0x79   : > { %v1291_v11 = vunpack.c.l.b16 %v1271_v44  ;;  %v1459_v33 = vrot.slane %v1457_v40, 1  ;;  %v1514_v49 = vsel %vm2498_vm0, %v1477_v31, %v1496_v12  ;;  %v1478_v13 = vperm.slane %v2320_v19, 1 }
  0x7a   : > { %v1534_v7 = vunpack.c.l.b16 %v1514_v49  ;;  %v1295_v62 = vunpack.c.l.b16 %v1275_v25 }
  0x7b   : > { %v1298_v26 = vpack.c.b16 %v1292_v32, %v1291_v11  ;;  %v1463_v60 = vor.u32 %v1461_v43, %v1459_v33 }
  0x7c   : > { %v1300_v10 = vpack.c.b16 %v1295_v62, %v1295_v62 }
  0x7d   : > { %v1471_v58 = vsel %vm2388_vm14, %v1463_v60, %v1469_v38 }
  0x7e   : > { %v1490_v57 = vunpack.c.l.b16 %v1471_v58 }
  0x80   : > { %v1499_v18 = vpack.c.b16 %v1490_v57, %v1490_v57 }
  0x82   : > { %v1517_v46 = vsel %vm2436_vm6, %v1480_v42, %v1499_v18 }
  0x83   : > { %v1537_v19 = vunpack.c.l.b16 %v1517_v46 }
  0x85   : > { %1897 = vmatmul.msk.bf16.gmra.mxu2 %vm797_vm2, %v2523_v23  ;;  %v1495_v23 = vpack.c.b16 %v1486_v14, %v1486_v14 }
  0x86   : > { %1908 = vmatmul.msk.bf16.gmra.mxu0 %vm797_vm2, %v2506_v17  ;;  %v1454_v17 = vshrl.u32 %v2273_v56, 16 }
  0x87   : > { %1913 = vmatmul.msk.bf16.gmra.mxu1 %vm1014_vm7, %v1539_v54  ;;  %v1513_v37 = vsel %vm2492_vm15, %v1476_v8, %v1495_v23 }
  0x88   : > { %1902 = vmatmul.msk.bf16.gmra.mxu3 %vm1014_vm7, %v1298_v26  ;;  %v1456_v59 = vor.u32 %v1454_v17, %v2542_v4  ;;  %v1533_v61 = vunpack.c.l.b16 %v1513_v37 }
  0x8a   : > { %v1460_v34 = vsel %vm862_vm3, %v1456_v59, %v1459_v33  ;;  %v1540_v1 = vpack.c.b16 %v1534_v7, %v1533_v61 }
  0x8b   : > { %v1488_v30 = vunpack.c.l.b16 %v1460_v34  ;;  %v1489_v4 = vunpack.c.h.b16 %v1460_v34 }
  0x8d   : > { %v1497_v41 = vpack.c.b16 %v1488_v30, %v1488_v30  ;;  %v1498_v15 = vpack.c.b16 %v1489_v4, %v1489_v4 }
  0x8f   : > { %v1515_v35 = vsel %vm2356_vm12, %v1478_v13, %v1497_v41 }
  0x90   : > { %v1535_v0 = vunpack.c.l.b16 %v1515_v35 }
  0x95   : > { %1898 = vmatmul.msk.bf16.gmra.mxu2 %vm797_vm2, %v2540_v45  ;;  %v1516_v45 = vsel %vm2369_vm13, %v1479_v5, %v1498_v15 }
  0x96   : > { %1909 = vmatmul.msk.bf16.gmra.mxu0 %vm797_vm2, %v2273_v56  ;;  %v1536_v56 = vunpack.c.l.b16 %v1516_v45 }
  0x97   : > { %1914 = vmatmul.msk.bf16.gmra.mxu1 %vm1014_vm7, %v1540_v1 }
  0x98   : > { %1903 = vmatmul.msk.bf16.gmra.mxu3 %vm1014_vm7, %v1299_v20  ;;  %v1541_v2 = vpack.c.b16 %v1536_v56, %v1535_v0  ;;  %v1542_v20 = vpack.c.b16 %v1537_v19, %v1537_v19 }
  0xa6   : > { %1910 = vmatmul.msk.bf16.gmra.mxu0 %vm797_vm2, %v1369_v9 }
  0xa7   : > { %1915 = vmatmul.msk.bf16.gmra.mxu1 %vm1014_vm7, %v1541_v2 }
  0xa8   : > { %1904 = vmatmul.msk.bf16.gmra.mxu3 %vm1014_vm7, %v1300_v10 }
  0xb3   : > { %v826_v21 = vpop.f32.mrf.mxu0 }
  0xb4   : > { %v853_v31 = vadd.f32 %v2637_v24, %v826_v21 }
  0xb7   : > { %1916 = vmatmul.msk.bf16.gmra.mxu1 %vm1014_vm7, %v1542_v20 }
  0xb8   : > { %v841_v55 = vpop.f32.mrf.mxu2 }
  0xb9   : > { %v859_v47 = vadd.f32 %v2637_v24, %v841_v55 }
  0xbb   : > { %v828_v63 = vpop.f32.mrf.mxu0 }
  0xbc   : > { %v854_v58 = vadd.f32 %v2637_v24, %v828_v63 }
  0xc0   : > { %v843_v16 = vpop.f32.mrf.mxu2 }
  0xc1   : > { %v860_v25 = vadd.f32 %v2637_v24, %v843_v16 }
  0xc3   : > { %v831_v52 = vpop.f32.mrf.mxu0 }
  0xc4   : > { %v1043_v50 = vpop.f32.mrf.mxu1  ;;  %v855_v46 = vadd.f32 %v2637_v24, %v831_v52 }
  0xc5   : > { %v1067_v12 = vadd.f32 %v1043_v50, %v853_v31 }
  0xc8   : > { %v846_v39 = vpop.f32.mrf.mxu2 }
  0xc9   : > { %v861_v22 = vadd.f32 %v2637_v24, %v846_v39 }
  0xcb   : > { %v833_v51 = vpop.f32.mrf.mxu0  ;;  %v1058_v48 = vpop.f32.mrf.mxu3 }
  0xcc   : > { %v2641_v27 = vadd.f32 %v1058_v48, %v859_v47  ;;  %v1045_v44 = vpop.f32.mrf.mxu1  ;;  %v856_v62 = vadd.f32 %v2637_v24, %v833_v51 }
  0xcd   : > { %v1068_v59 = vadd.f32 %v1045_v44, %v854_v58 }
  0xd0   : > { %v848_v53 = vpop.f32.mrf.mxu2 }
  0xd3   : > { %v836_v6 = vpop.f32.mrf.mxu0  ;;  %v1060_v36 = vpop.f32.mrf.mxu3 }
  0xd4   : > { %v2644_v3 = vadd.f32 %v1060_v36, %v860_v25  ;;  %v1048_v11 = vpop.f32.mrf.mxu1  ;;  %v857_v16 = vadd.f32 %v2637_v24, %v836_v6 }
  0xd5   : > { %v1069_v4 = vadd.f32 %v1048_v11, %v855_v46 }
  0xd8   : > { %v1128_v32 = vpop.f32.mrf.mxu2 }
  0xd9   : > { %v1152_v17 = vadd.f32 %v1128_v32, %v1067_v12 }
  0xdb   : > { %v2646_v9 = vpop.f32.mrf.mxu0  ;;  %v1063_v28 = vpop.f32.mrf.mxu3 }
  0xdc   : > { %v2648_v54 = vadd.f32 %v1063_v28, %v861_v22  ;;  %v1050_v26 = vpop.f32.mrf.mxu1  ;;  %v858_v11 = vadd.f32 %v2637_v24, %v2646_v9 }
  0xdd   : > { %v1070_v2 = vadd.f32 %v1050_v26, %v856_v62 }
  0xe0   : > { %v1130_v14 = vpop.f32.mrf.mxu2 }
  0xe1   : > { %v1153_v7 = vadd.f32 %v1130_v14, %v1068_v59 }
  0xe3   : > { %v1397_v29 = vpop.f32.mrf.mxu0  ;;  %v1065_v40 = vpop.f32.mrf.mxu3 }
  0xe4   : > { %v1053_v38 = vpop.f32.mrf.mxu1 }
  0xe5   : > { %v1071_v39 = vadd.f32 %v1053_v38, %v857_v16 }
  0xe8   : > { %v1133_v8 = vpop.f32.mrf.mxu2 }
  0xe9   : > { %v1154_v15 = vadd.f32 %v1133_v8, %v1069_v4 }
  0xeb   : > { %v1399_v23 = vpop.f32.mrf.mxu0  ;;  %v1328_v33 = vpop.f32.mrf.mxu3 }
  0xec   : > { %v1055_v43 = vpop.f32.mrf.mxu1  ;;  %v1352_v37 = vadd.f32 %v1328_v33, %v1152_v17 }
  0xed   : > { %v1072_v32 = vadd.f32 %v1055_v43, %v858_v11 }
  0xee   : > { %v1421_v42 = vadd.f32 %v1397_v29, %v1352_v37 }
  0xf0   : > { %v1135_v60 = vpop.f32.mrf.mxu2 }
  0xf1   : > { %v1155_v20 = vadd.f32 %v1135_v60, %v1070_v2 }
  0xf3   : > { %v1402_v49 = vpop.f32.mrf.mxu0  ;;  %v1330_v57 = vpop.f32.mrf.mxu3 }
  0xf4   : > { %v1570_v61 = vpop.f32.mrf.mxu1  ;;  %v1353_v1 = vadd.f32 %v1330_v57, %v1153_v7 }
  0xf5   : > { %v1594_v18 = vadd.f32 %v1570_v61, %v1421_v42 }
  0xf6   : > { %v1422_v13 = vadd.f32 %v1399_v23, %v1353_v1 }
  0xf7   : > { %1603 = vst [vmem:[%s2656_s7] sm:$0xff] %v1594_v18 }
  0xf8   : > { %v1138_v34 = vpop.f32.mrf.mxu2 }
  0xf9   : > { %v1156_v44 = vadd.f32 %v1138_v34, %v1071_v39 }
  0xfb   : > { %v1404_v30 = vpop.f32.mrf.mxu0  ;;  %v1333_v5 = vpop.f32.mrf.mxu3 }
  0xfc   : > { %v1572_v41 = vpop.f32.mrf.mxu1  ;;  %v1354_v0 = vadd.f32 %v1333_v5, %v1154_v15 }
  0xfd   : > { %v1595_v35 = vadd.f32 %v1572_v41, %v1422_v13 }
  0xfe   : > { %v1423_v10 = vadd.f32 %v1402_v49, %v1354_v0 }
  0xff   : > { %1604 = vst [vmem:[%s2656_s7 + $0x8] sm:$0xff] %v1595_v35 }
 0x100   : > { %v1140_v45 = vpop.f32.mrf.mxu2 }
 0x101   : > { %v1157_v14 = vadd.f32 %v1140_v45, %v1072_v32 }
 0x103   : > { %v1407_v56 = vpop.f32.mrf.mxu0  ;;  %v1335_v19 = vpop.f32.mrf.mxu3 }
 0x104   : > { %v1575_v21 = vpop.f32.mrf.mxu1  ;;  %v1355_v52 = vadd.f32 %v1335_v19, %v1155_v20 }
 0x105   : > { %v1596_v55 = vadd.f32 %v1575_v21, %v1423_v10 }
 0x106   : > { %v1424_v22 = vadd.f32 %v1404_v30, %v1355_v52 }
 0x107   : > { %1605 = vst [vmem:[%s2656_s7 + $0x10] sm:$0xff] %v1596_v55 }
 0x108   : > { %v1143_v63 = vpop.f32.mrf.mxu2 }
 0x109   : > { %v1158_v33 = vadd.f32 %v1143_v63, %v2641_v27 }
 0x10b   : > { %v1409_v50 = vpop.f32.mrf.mxu0  ;;  %v1338_v47 = vpop.f32.mrf.mxu3 }
 0x10c   : > { %v1577_v48 = vpop.f32.mrf.mxu1  ;;  %v1356_v25 = vadd.f32 %v1338_v47, %v1156_v44 }
 0x10d   : > { %v1597_v51 = vadd.f32 %v1577_v48, %v1424_v22 }
 0x10e   : > { %v1425_v28 = vadd.f32 %v1407_v56, %v1356_v25 }
 0x10f   : > { %1606 = vst [vmem:[%s2656_s7 + $0x18] sm:$0xff] %v1597_v51 }
 0x110   : > { %v1145_v53 = vpop.f32.mrf.mxu2 }
 0x111   : > { %v1159_v58 = vadd.f32 %v1145_v53, %v2644_v3 }
 0x113   : > { %v1412_v36 = vpop.f32.mrf.mxu0  ;;  %v1340_v6 = vpop.f32.mrf.mxu3 }
 0x114   : > { %v1580_v26 = vpop.f32.mrf.mxu1  ;;  %v1357_v38 = vadd.f32 %v1340_v6, %v1157_v14 }
 0x115   : > { %v1598_v29 = vadd.f32 %v1580_v26, %v1425_v28 }
 0x116   : > { %v1426_v31 = vadd.f32 %v1409_v50, %v1357_v38 }
 0x117   : > { %1607 = vst [vmem:[%s2656_s7 + $0x20] sm:$0xff] %v1598_v29 }
 0x118   : > { %v1148_v40 = vpop.f32.mrf.mxu2 }
 0x119   : > { %v1160_v27 = vadd.f32 %v1148_v40, %v2648_v54 }
 0x11b   : > { %v1414_v8 = vpop.f32.mrf.mxu0  ;;  %v1343_v23 = vpop.f32.mrf.mxu3 }
 0x11c   : > { %v1582_v12 = vpop.f32.mrf.mxu1  ;;  %v1358_v24 = vadd.f32 %v1343_v23, %v1158_v33 }
 0x11d   : > { %v1599_v17 = vadd.f32 %v1582_v12, %v1426_v31 }
 0x11e   : > { %v1427_v43 = vadd.f32 %v1412_v36, %v1358_v24 }
 0x11f   : > { %1608 = vst [vmem:[%s2656_s7 + $0x28] sm:$0xff] %v1599_v17 }
 0x120   : > { %v1150_v60 = vpop.f32.mrf.mxu2 }
 0x123   : > { %v1417_v9 = vpop.f32.mrf.mxu0  ;;  %v1345_v37 = vpop.f32.mrf.mxu3 }
 0x124   : > { %v1585_v49 = vpop.f32.mrf.mxu1  ;;  %v1359_v42 = vadd.f32 %v1345_v37, %v1159_v58 }
 0x125   : > { %v1600_v59 = vadd.f32 %v1585_v49, %v1427_v43 }
 0x126   : > { %v1428_v61 = vadd.f32 %v1414_v8, %v1359_v42 }
 0x127   : > { %1609 = vst [vmem:[%s2656_s7 + $0x30] sm:$0xff] %v1600_v59 }
 0x12b   : > { %v1419_v57 = vpop.f32.mrf.mxu0  ;;  %v1348_v7 = vpop.f32.mrf.mxu3 }
 0x12c   : > { %v1587_v18 = vpop.f32.mrf.mxu1  ;;  %v1360_v46 = vadd.f32 %v1348_v7, %v1160_v27 }
 0x12d   : > { %v1601_v34 = vadd.f32 %v1587_v18, %v1428_v61 }
 0x12e   : > { %v1429_v1 = vadd.f32 %v1417_v9, %v1360_v46 }
 0x12f   : > { %1610 = vst [vmem:[%s2656_s7 + $0x38] sm:$0xff] %v1601_v34 }
 0x133   : > { %v1350_v30 = vpop.f32.mrf.mxu3 }
 0x134   : > { %v1590_v4 = vpop.f32.mrf.mxu1 }
 0x135   : > { %v1602_v13 = vadd.f32 %v1590_v4, %v1429_v1 }
 0x137   : > { %1611 = vst [vmem:[%s2656_s7 + $0x40] sm:$0xff] %v1602_v13 }
 0x13c   : > { %v1592_v5 = vpop.f32.mrf.mxu1 }
 0x13d PF: > { %s16_s25 = sadd.s32 1, %s2060_s25   ;;  %s2721_s21 = smov %s2048_s22 }
 0x13e   : > { %p13_p11 = scmp.ge.s32.totalorder %s16_s25, 4   ;;  %s2722_s22 = smov %s2136_s29 }
 0x13f   : > { %s2723_s23 = smov %s2056_s24  ;;  %s2724_s24 = smov %s2726_s26 }
 0x140   :  { %15 = sbr.rel (!%p13_p11) target bundleno = 3 (0x3), region = 177 }

</bundles_post_ra>
